<compile_context>
chip_gen: v7x
topology: tpu7x:2x2x1
jax: 0.10.0
libtpu: 0.0.40
codegen_flags: <defaults>
</compile_context>

<pallas_src>
import jax
import jax.numpy as jnp
import numpy as np
from jax.experimental import pallas as pl
from jax.experimental.pallas import tpu as pltpu  # noqa: F401  (TPU backend)


def _timestep_embedder_kernel(ts_ref, pe_ref, w1_ref, b1_ref, w2_ref, b2_ref,
                              o_ref):
    # ts_ref: (B, 1) int32 | pe_ref: (max_len, D) | w*: (D, D) | b*: (1, D)
    # o_ref : (B, D)
    ts = ts_ref[...]                                        # (B, 1)
    B = ts.shape[0]
    max_len = pe_ref.shape[0]

    # In-kernel gather as a one-hot matmul (MXU-friendly, no per-row DMAs).
    pos = jax.lax.broadcasted_iota(jnp.int32, (B, max_len), 1)   # (B, max_len)
    onehot = (pos == ts).astype(jnp.float32)                     # (B, max_len)
    x = jnp.dot(onehot, pe_ref[...],
                preferred_element_type=jnp.float32)              # (B, D)

    # Linear -> SiLU -> Linear, all rows batched in one MXU pass each.
    h = jnp.dot(x, w1_ref[...],
                preferred_element_type=jnp.float32) + b1_ref[...]
    h = h * jax.nn.sigmoid(h)                                    # SiLU
    y = jnp.dot(h, w2_ref[...],
                preferred_element_type=jnp.float32) + b2_ref[...]
    o_ref[...] = y.astype(o_ref.dtype)


def timestep_embedder(timesteps, pe, w1, b1, w2, b2):
    """timesteps: (B,) int; pe: (max_len, 1, D); w*: (D, D); b*: (1, D).

    Returns (B, 1, D) float32, matching time_embed(pe[timesteps]) in PyTorch.
    """
    B = timesteps.shape[0]
    max_len, one, D = pe.shape
    assert one == 1

    pe2d = pe.reshape(max_len, D)                     # squeeze singleton dim
    ts2d = timesteps.reshape(B, 1).astype(jnp.int32)  # vector-friendly layout

    itemsize = 4
    cost = pl.CostEstimate(
        flops=2 * B * max_len * D + 2 * (2 * B * D * D),
        transcendentals=B * D,
        bytes_accessed=(B * itemsize            # timesteps
                        + max_len * D * itemsize  # pe table
                        + 2 * D * D * itemsize    # weights
                        + 2 * D * itemsize        # biases
                        + B * D * itemsize),      # output
    )

    # grid=() : single invocation, every operand is a full VMEM-resident block.
    out = pl.pallas_call(
        _timestep_embedder_kernel,
        out_shape=jax.ShapeDtypeStruct((B, D), jnp.float32),
        cost_estimate=cost,
    )(ts2d, pe2d, w1, b1, w2, b2)

    return out.reshape(B, 1, D)


def make_sinusoidal_pe(max_len, d_model):
    pos = np.arange(max_len, dtype=np.float32)[:, None]
    div = np.exp(np.arange(0, d_model, 2, dtype=np.float32)
                 * (-np.log(10000.0) / d_model))
    pe = np.zeros((max_len, d_model), dtype=np.float32)
    pe[:, 0::2] = np.sin(pos * div)
    pe[:, 1::2] = np.cos(pos * div)
    return jnp.asarray(pe[:, None, :])   # (max_len, 1, d_model)


if __name__ == "__main__":
    latent_dim = 32        # small, consistent with the module
    max_len = 64
    B = 2

    key = jax.random.PRNGKey(0)
    k1, k2, k3, k4, k5 = jax.random.split(key, 5)

    # Deterministic synthetic parameters (Linear(latent_dim, latent_dim) x 2),
    # stored as (in, out) so the kernel computes x @ W + b.
    w1 = jax.random.normal(k1, (latent_dim, latent_dim), jnp.float32) * 0.05
    b1 = jax.random.normal(k2, (1, latent_dim), jnp.float32) * 0.05
    w2 = jax.random.normal(k3, (latent_dim, latent_dim), jnp.float32) * 0.05
    b2 = jax.random.normal(k4, (1, latent_dim), jnp.float32) * 0.05

    pe = make_sinusoidal_pe(max_len, latent_dim)          # (max_len, 1, D)
    timesteps = jax.random.randint(k5, (B,), 0, max_len, dtype=jnp.int32)

    out = timestep_embedder(timesteps, pe, w1, b1, w2, b2)
    out = jax.block_until_ready(out)

    # Pure-JAX reference of the PyTorch forward.
    x_ref = pe[timesteps]                                  # (B, 1, D)
    h_ref = x_ref @ w1 + b1
    h_ref = h_ref * jax.nn.sigmoid(h_ref)                  # SiLU
    y_ref = h_ref @ w2 + b2

    np.testing.assert_allclose(np.asarray(out), np.asarray(y_ref),
                               rtol=1e-5, atol=1e-5)
    print("KERNEL_OK")
</pallas_src>

<mosaic_0001>
module attributes {stable_mosaic.version = 11 : i64} {
  func.func @_timestep_embedder_kernel(%arg0: memref<2x1xi32, #tpu.memory_space<vmem>>, %arg1: memref<64x32xf32, #tpu.memory_space<vmem>>, %arg2: memref<32x32xf32, #tpu.memory_space<vmem>>, %arg3: memref<1x32xf32, #tpu.memory_space<vmem>>, %arg4: memref<32x32xf32, #tpu.memory_space<vmem>>, %arg5: memref<1x32xf32, #tpu.memory_space<vmem>>, %arg6: memref<2x32xf32, #tpu.memory_space<vmem>>) attributes {dimension_semantics = [], scalar_prefetch = 0 : i64, scratch_operands = 0 : i64, tpu.core_type = #tpu.core_type<tc>} {
    %c0 = arith.constant 0 : index
    %c0_0 = arith.constant 0 : index
    %0 = vector.load %arg0[%c0, %c0_0] : memref<2x1xi32, #tpu.memory_space<vmem>>, vector<2x1xi32>
    %1 = tpu.iota {dimensions = array<i32: 1>} : vector<2x64xi32>
    %2 = vector.broadcast %0 : vector<2x1xi32> to vector<2x64xi32>
    %3 = arith.cmpi eq, %1, %2 : vector<2x64xi32>
    %4 = arith.extui %3 : vector<2x64xi1> to vector<2x64xi32>
    %5 = arith.sitofp %4 : vector<2x64xi32> to vector<2x64xf32>
    %c0_1 = arith.constant 0 : index
    %c0_2 = arith.constant 0 : index
    %6 = vector.load %arg1[%c0_1, %c0_2] : memref<64x32xf32, #tpu.memory_space<vmem>>, vector<64x32xf32>
    %cst = arith.constant dense<0.000000e+00> : vector<2x32xf32>
    %7 = tpu.matmul %5, %6, %cst {dimension_numbers = #tpu.dot_dimension_numbers<[1], [0], [0], [1], [0, 0, 1, 1], [], []>} : vector<2x64xf32>, vector<64x32xf32>, vector<2x32xf32> -> vector<2x32xf32>
    %c0_3 = arith.constant 0 : index
    %c0_4 = arith.constant 0 : index
    %8 = vector.load %arg2[%c0_3, %c0_4] : memref<32x32xf32, #tpu.memory_space<vmem>>, vector<32x32xf32>
    %cst_5 = arith.constant dense<0.000000e+00> : vector<2x32xf32>
    %9 = tpu.matmul %7, %8, %cst_5 {dimension_numbers = #tpu.dot_dimension_numbers<[1], [0], [0], [1], [0, 0, 1, 1], [], []>} : vector<2x32xf32>, vector<32x32xf32>, vector<2x32xf32> -> vector<2x32xf32>
    %c0_6 = arith.constant 0 : index
    %c0_7 = arith.constant 0 : index
    %10 = vector.load %arg3[%c0_6, %c0_7] : memref<1x32xf32, #tpu.memory_space<vmem>>, vector<1x32xf32>
    %11 = vector.broadcast %10 : vector<1x32xf32> to vector<2x32xf32>
    %12 = arith.addf %9, %11 : vector<2x32xf32>
    %13 = arith.negf %12 : vector<2x32xf32>
    %14 = math.exp %13 : vector<2x32xf32>
    %cst_8 = arith.constant 1.000000e+00 : f32
    %15 = vector.broadcast %cst_8 : f32 to vector<2x32xf32>
    %16 = arith.addf %15, %14 : vector<2x32xf32>
    %17 = arith.divf %15, %16 : vector<2x32xf32>
    %18 = arith.mulf %12, %17 : vector<2x32xf32>
    %c0_9 = arith.constant 0 : index
    %c0_10 = arith.constant 0 : index
    %19 = vector.load %arg4[%c0_9, %c0_10] : memref<32x32xf32, #tpu.memory_space<vmem>>, vector<32x32xf32>
    %cst_11 = arith.constant dense<0.000000e+00> : vector<2x32xf32>
    %20 = tpu.matmul %18, %19, %cst_11 {dimension_numbers = #tpu.dot_dimension_numbers<[1], [0], [0], [1], [0, 0, 1, 1], [], []>} : vector<2x32xf32>, vector<32x32xf32>, vector<2x32xf32> -> vector<2x32xf32>
    %c0_12 = arith.constant 0 : index
    %c0_13 = arith.constant 0 : index
    %21 = vector.load %arg5[%c0_12, %c0_13] : memref<1x32xf32, #tpu.memory_space<vmem>>, vector<1x32xf32>
    %22 = vector.broadcast %21 : vector<1x32xf32> to vector<2x32xf32>
    %23 = arith.addf %20, %22 : vector<2x32xf32>
    %c0_14 = arith.constant 0 : index
    %c0_15 = arith.constant 0 : index
    %24 = vector.load %arg6[%c0_14, %c0_15] : memref<2x32xf32, #tpu.memory_space<vmem>>, vector<2x32xf32>
    tpu.vector_store %arg6[%c0_14, %c0_15], %23 {strides = array<i32>} : memref<2x32xf32, #tpu.memory_space<vmem>>, vector<2x32xf32>,
    return
  }
}

</mosaic_0001>

<bundles_post_ra>
// kernel: tpu_custom_call.1
= control target key start
LH: loop header
LB: loop body
LE: loop exit
PB: predicated region body
PF: predicated region fallthrough
CT: control target
= control target key end

     0   :  { %v432_v3 = vmov 0   ;;  %v433_v4 = vmov 0.0|0.0   ;;  %vm434_vm0 = vmmov 0   ;;  %v435_v11 = vmov 0.0   ;;  %s546_s0 = inlined_call_operand.vmem [shape: s32[2,1], index: 0, kind: input, shape index: {}]   ;;  %s547_s1 = inlined_call_operand.vmem [shape: f32[64,32], index: 1, kind: input, shape index: {}]   ;;  %s548_s2 = inlined_call_operand.vmem [shape: f32[32,32], index: 2, kind: input, shape index: {}]   ;;  %s549_s3 = inlined_call_operand.vmem [shape: f32[1,32], index: 3, kind: input, shape index: {}]   ;;  %s550_s4 = inlined_call_operand.vmem [shape: f32[32,32], index: 4, kind: input, shape index: {}]   ;;  %s551_s5 = inlined_call_operand.vmem [shape: f32[1,32], index: 5, kind: input, shape index: {}]   ;;  %s552_s6 = inlined_call_operand.hbm [shape: f32[2,32], index: 6, kind: output, shape index: {}]  }
   0x1   :  { %v24_v0 = vld [vmem:[%s546_s0] sm:$0x3]  ;;  %v34_v2 = vld [vmem:[%s547_s1 + $0x8] sm:$0xff]  ;;  %403 = vset.pattern.permute.xlu0 %v432_v3  ;;  %374 = vmatprep.subr.bf16.mxu0 %v433_v4  ;;  %v35_v6 = vld [vmem:[%s547_s1 + $0x10] sm:$0xff] }
   0x2   :  { %v33_v1 = vld [vmem:[%s547_s1] sm:$0xff]  ;;  %v36_v7 = vld [vmem:[%s547_s1 + $0x18] sm:$0xff]  ;;  %28 = vperm.xlu0 %403, %v24_v0   ;;  %386 = vmatprep.subr.bf16.mxu1 %v433_v4  ;;  %v38_v10 = vld [vmem:[%s547_s1 + $0x28] sm:$0xff] }
   0x3   :  { %v375_v5 = vpack.c.bf16 %v34_v2, %v33_v1  ;;  %v378_v8 = vpack.c.bf16 %v36_v7, %v35_v6  ;;  %v37_v9 = vld [vmem:[%s547_s1 + $0x20] sm:$0xff]  ;;  %349 = vmatprep.mubr.msk.f32.mxu0 %vm434_vm0, %v435_v11 }
   0x5   :  { %376 = vmatpush3.bf16.msra.mxu0 %v375_v5 }
   0x6   :  { %11 = vsyncpa [#allocation3], 0  ;;  %377 = vmatprep.subr.bf16.mxu0 %v433_v4  ;;  %v115_v12 = vld [vmem:[%s548_s2] sm:$0xff]  ;;  %v116_v13 = vld [vmem:[%s548_s2 + $0x8] sm:$0xff]  ;;  %360 = vmatprep.mubr.msk.f32.mxu1 %vm434_vm0, %v435_v11  ;;  %v381_v17 = vpack.c.bf16 %v38_v10, %v37_v9  ;;  %v25_v22 = vlaneseq  ;;  %vm41_vm1 = vcmask 523264   ;;  %vm126_vm3 = vcmask 261120  }
   0x7   :  { %v117_v14 = vld [vmem:[%s548_s2 + $0x10] sm:$0xff]  ;;  %v387_v15 = vpack.c.bf16 %v116_v13, %v115_v12  ;;  %v118_v16 = vld [vmem:[%s548_s2 + $0x18] sm:$0xff]  ;;  %v207_v28 = vld [vmem:[%s550_s4] sm:$0xff]  ;;  %s436_s0 = smov [#allocation2]   ;;  %vm291_vm4 = vcmask 254976  }
   0x8   :  { %v390_v18 = vpack.c.bf16 %v118_v16, %v117_v14  ;;  %v39_v19 = vld [vmem:[%s547_s1 + $0x30] sm:$0xff]  ;;  %v40_v20 = vld [vmem:[%s547_s1 + $0x38] sm:$0xff]  ;;  %v26_v23 = vand.u32 127, %v25_v22  ;;  %v208_v29 = vld [vmem:[%s550_s4 + $0x8] sm:$0xff]  ;;  %s299_s7 = sshll.u32 %s436_s0, 4  ;;  %s300_s7 = int_to_ptr.vmem [resolvable:$true] %s299_s7 }
   0x9   :  { %379 = vmatpush3.bf16.msra.mxu0 %v378_v8  ;;  %388 = vmatpush3.bf16.msra.mxu1 %v387_v15  ;;  %v384_v21 = vpack.c.bf16 %v40_v20, %v39_v19  ;;  %v393_v30 = vpack.c.bf16 %v208_v29, %v207_v28  ;;  %v209_v31 = vld [vmem:[%s550_s4 + $0x10] sm:$0xff]  ;;  %v210_v32 = vld [vmem:[%s550_s4 + $0x18] sm:$0xff]  ;;  %v309_v34 = vld [vmem:[%s549_s3] ss:$0 sm:$0xff]  ;;  %s408_s3 = scalar_lea.vmem %s300_s7, 32  ;;  %p413_p1 = scmp.lt.s32.totalorder %s300_s7, %s300_s7 }
   0xa   :  { %380 = vmatprep.subr.bf16.mxu0 %v433_v4  ;;  %389 = vmatprep.subr.bf16.mxu1 %v433_v4  ;;  %v396_v33 = vpack.c.bf16 %v210_v32, %v209_v31  ;;  %v312_v43 = vld [vmem:[%s551_s5] ss:$0 sm:$0xff]  ;;  %p409_p0 = scmp.ne.s32.totalorder %s300_s7, %s408_s3  ;;  %p414_p2 = scmp.lt.s32.totalorder %s408_s3, %s408_s3 }
   0xc   :  { %p415_p3 = por %p414_p2, %p413_p1 }
   0xd   :  { %382 = vmatpush3.bf16.msra.mxu0 %v381_v17  ;;  %391 = vmatpush3.bf16.msra.mxu1 %v390_v18 }
   0xe   :  { %383 = vmatprep.subr.bf16.mxu0 %v433_v4  ;;  %392 = vmatprep.subr.bf16.mxu1 %v433_v4  ;;  %p416_p4 = pnand %p415_p3, %p409_p0 }
  0x11   :  { %385 = vmatpush3.bf16.msra.mxu0 %v384_v21 }
  0x81   :  { %v29_v24 = vpop.permute.xlu0 %28 }
  0x82   :  { %vm30_vm2 = vcmp.eq.s32.totalorder %v26_v23, %v29_v24 }
  0x83   :  { %v307_v25 = vsel %vm30_vm2, 1.0, %v435_v11 }
  0x84   :  { %350 = vmatmul.mubr.msk.f32.vlgmr.msra.gmra.mrb[0].mxu0 %vm41_vm1, %v307_v25 }
 0x157   :  { %v111_v26 = vpop.f32.mrb[0].mxu0 }
 0x158   :  { %v351_v27 = vpop.f32.mrb[1].mxu0  ;;  %361 = vmatmul.mubr.msk.f32.vlgmr.msra.gmra.mrb[0].mxu1 %vm126_vm3, %v111_v26 }
 0x159   :  { %371 = vmatprep.mubr.msk.f32.mxu1 %vm434_vm0, %v435_v11  ;;  %394 = vmatpush3.bf16.msra.mxu1 %v393_v30 }
 0x15a   :  { %395 = vmatprep.subr.bf16.mxu1 %v433_v4 }
 0x15d   :  { %397 = vmatpush3.bf16.msra.mxu1 %v396_v33 }
 0x22b   :  { %v196_v35 = vpop.f32.mrb[0].mxu1 }
 0x22c   :  { %v197_v36 = vadd.f32 %v309_v34, %v196_v35  ;;  %v362_v37 = vpop.f32.mrb[1].mxu1 }
 0x22e   :  { %v311_v38 = vmul.f32 -1.442695, %v197_v36 }
 0x230   :  { %404 = vpow2.f32 %v311_v38 }
 0x23a   :  { %v405_v39 = vpop.eup %404 }
 0x23b   :  { %v203_v40 = vadd.f32 1.0, %v405_v39 }
 0x23d   :  { %406 = vrcp.f32 %v203_v40 }
 0x247   :  { %v407_v41 = vpop.eup %406 }
 0x248   :  { %v206_v42 = vmul.f32 %v407_v41, %v197_v36 }
 0x24a   :  { %372 = vmatmul.mubr.msk.f32.vlgmr.msra.gmra.mrb[2].mxu1 %vm126_vm3, %v206_v42 }
 0x31d   :  { %v287_v44 = vpop.f32.mrb[2].mxu1 }
 0x31e   :  { %v288_v45 = vadd.f32 %v312_v43, %v287_v44  ;;  %v373_v46 = vpop.f32.mrb[3].mxu1 }
 0x320   :  { %292 = vst.msk [vmem:[#allocation2] sm:$0x3] %vm291_vm4, %v288_v45 }
 0x321   :  { %419 = shalt.err (!%p416_p4)
}
 0x322   :  { %s420_s10 = scalar_lea.hbm %s552_s6, 32 }
 0x323   :  { %p421_p5 = scmp.ne.s32.totalorder %s552_s6, %s420_s10  ;;  %p424_p6 = scmp.lt.u32.totalorder %s420_s10, %s552_s6 }
 0x325   :  { %p426_p7 = pnand %p424_p6, %p421_p5 }
 0x327   :  { %429 = shalt.err (!%p426_p7)
}
 0x328   :  { %302 = dma.vmem_to_hbm [thread:$0]  %s300_s7, 32, %s552_s6, [#allocation3]  }
 0x329   :  { %430 = dma.done.wait [#allocation3], 32  }
 0x32a   :  { %431 = vsyncadd [#allocation3], 4294967264 }
 0x32b   :  { %306 = vsyncpa [#allocation3], 1 }

</bundles_post_ra>
